<compile_context>
chip_gen: v5e
topology: v5e:2x2
jax: 0.10.0
libtpu: 0.0.40
codegen_flags: <defaults>
</compile_context>

<pallas_src>
import math
from functools import partial

import jax
import jax.numpy as jnp
from jax import lax
from jax.experimental import pallas as pl
from jax.experimental.pallas import tpu as pltpu


# ---------------- per-generation VMEM budget ----------------

def _vmem_limit_bytes():
    """Scoped-VMEM limit derived from the actual chip (v5e/v6e: 128 MiB,
    v7x: 64 MiB per TensorCore); leave ~40% headroom for compiler scratch."""
    try:
        info = pltpu.get_tpu_info()
        cap = int(getattr(info, "vmem_capacity_bytes", 0) or (64 * 1024 * 1024))
    except Exception:
        cap = 64 * 1024 * 1024          # conservative fallback
    return min(int(cap * 3 // 5), 96 * 1024 * 1024)


_VMEM_LIMIT = _vmem_limit_bytes()


def _round_up(x, m):
    return (x + m - 1) // m * m


def _pick_tile(dim, target, gran):
    """Block size for `dim`: the full dim if it fits the target (a block equal to
    the full array dim is always legal), else the largest multiple of `gran`
    <= target that divides `dim` (no padding), else `target` (padding fallback)."""
    if dim <= target:
        return dim
    best = 0
    t = (target // gran) * gran
    while t >= gran:
        if dim % t == 0:
            best = t
            break
        t -= gran
    if best >= max(gran, target // 8):
        return best
    return (target // gran) * gran


# ---------------- Linear: y = x @ w + b (tiled, pipelined) ----------------

def _linear_kernel(x_ref, w_ref, b_ref, o_ref, acc_ref):
    # grid = (M/tm, Nout/tn, K/tk); K (reduction) is the innermost axis.
    @pl.when(pl.program_id(2) == 0)
    def _():
        # Init the accumulator with the broadcast bias: the bias block index is
        # constant across k (no extra DMA) and this drops the finalize add.
        acc_ref[...] = jnp.broadcast_to(b_ref[...], acc_ref.shape).astype(jnp.float32)

    # bf16 operands on the MXU (weights pre-cast, activation block cast here),
    # f32 accumulation.
    acc_ref[...] += jnp.dot(x_ref[...].astype(w_ref.dtype), w_ref[...],
                            preferred_element_type=jnp.float32)

    @pl.when(pl.program_id(2) == pl.num_programs(2) - 1)
    def _():
        o_ref[...] = acc_ref[...].astype(o_ref.dtype)


def linear_pallas(x2d, w, b, *, tm=512, tn=1024, tk=512):
    """x2d: (M, K) activations, w: (K, Nout) weight (permuted / cast at
    prepare_params time), b: (Nout,) f32 bias."""
    M, K = x2d.shape
    Kw, Nout = w.shape
    assert K == Kw

    tm = _pick_tile(M, tm, 8)
    tk = _pick_tile(K, tk, 128)
    tn = _pick_tile(Nout, tn, 128)
    Mp, Kp, Np = _round_up(M, tm), _round_up(K, tk), _round_up(Nout, tn)

    # Zero padding is only a fallback for dims with no good divisor; never hit for
    # standard ViT sizes.  Zero K-padding keeps the reduction exact.
    # TODO(synk): if a layer hits the weight-pad path, hoist that pad into
    # prepare_params (it is per-call HBM traffic here).
    xp = x2d if (Mp == M and Kp == K) else jnp.pad(x2d, ((0, Mp - M), (0, Kp - K)))
    wp = w if (Kp == K and Np == Nout) else jnp.pad(w, ((0, Kp - K), (0, Np - Nout)))
    bp = (b if Np == Nout else jnp.pad(b, (0, Np - Nout))).reshape(1, Np)

    grid = (Mp // tm, Np // tn, Kp // tk)

    out = pl.pallas_call(
        _linear_kernel,
        out_shape=jax.ShapeDtypeStruct((Mp, Np), x2d.dtype),
        grid_spec=pltpu.PrefetchScalarGridSpec(
            num_scalar_prefetch=0,
            grid=grid,
            in_specs=[
                pl.BlockSpec((tm, tk), lambda i, j, k: (i, k)),
                pl.BlockSpec((tk, tn), lambda i, j, k: (k, j)),
                pl.BlockSpec((1, tn), lambda i, j, k: (0, j)),
            ],
            out_specs=pl.BlockSpec((tm, tn), lambda i, j, k: (i, j)),
            scratch_shapes=[pltpu.VMEM((tm, tn), jnp.float32)],
        ),
        compiler_params=pltpu.CompilerParams(
            dimension_semantics=("parallel", "parallel", "arbitrary"),
            vmem_limit_bytes=_VMEM_LIMIT,
        ),
        cost_estimate=pl.CostEstimate(
            flops=2 * M * K * Nout,
            transcendentals=0,
            bytes_accessed=(x2d.dtype.itemsize * M * K
                            + w.dtype.itemsize * K * Nout
                            + x2d.dtype.itemsize * M * Nout + 4 * Nout),
        ),
    )(xp, wp, bp)

    if Mp != M or Np != Nout:
        out = out[:M, :Nout]
    return out


# ---------------- Attention: grid = (batch, head-group, q-tile) ----------------

def _mha_kernel(q_ref, k_ref, v_ref, o_ref, *,
                scale, heads, head_dim, q_off, k_off, v_off, compute_dtype):
    """One (batch, head-group, q-tile) step.

    q_ref: (1, tq, W) — a q-row tile;  k_ref / v_ref: (1, N, W) — all keys/values.
    Lane-aligned path: W == heads*head_dim and all offsets are 0.
    Small-E fallback: W == 3E and q/k/v sit at static offsets inside the block.
    """
    D = head_dim
    outs = []
    for hl in range(heads):          # small static group (~128/head_dim heads)
        # Pre-scale q (O(tq*D) VPU work) instead of scaling the (tq, N) energy.
        qh = (q_ref[0, :, q_off + hl * D:q_off + (hl + 1) * D] * scale).astype(compute_dtype)
        kh = k_ref[0, :, k_off + hl * D:k_off + (hl + 1) * D].astype(compute_dtype)
        vh = v_ref[0, :, v_off + hl * D:v_off + (hl + 1) * D].astype(compute_dtype)
        # energy = q @ k^T contracting last dims (no materialized k.T); bf16
        # operands on the MXU, f32 accumulation.
        energy = lax.dot_general(qh, kh, (((1,), (1,)), ((), ())),
                                 preferred_element_type=jnp.float32)      # (tq, N)
        # Softmax statistics stay in f32.
        m = jnp.max(energy, axis=-1, keepdims=True)
        e = jnp.exp(energy - m)
        denom = jnp.sum(e, axis=-1, keepdims=True)
        att = (e * pl.reciprocal(denom, approx=True)).astype(compute_dtype)  # EUP
        outs.append(jnp.dot(att, vh, preferred_element_type=jnp.float32))    # (tq, D)
    blk = outs[0] if heads == 1 else jnp.concatenate(outs, axis=-1)
    # Single lane-dense store per grid step (v5e has a single vector-store slot).
    o_ref[0] = blk.astype(o_ref.dtype)


def attention_pallas(qkv, num_heads, emb_size, *, compute_dtype=jnp.bfloat16,
                     tq_target=512):
    """qkv: (B, N, 3E) with columns ordered (qkv, head, d).  Returns (B, N, E)
    already in 'b n (h d)' layout (feeds the output projection with no transpose)."""
    B, N, threeE = qkv.shape
    E = emb_size
    D = E // num_heads
    scale = 1.0 / math.sqrt(float(E))   # spec divides by sqrt(emb_size), not head_dim

    # Head grouping: g heads per grid step so the per-step column slab is
    # 128-lane aligned (group width g*D % 128 == 0) whenever possible.
    g = 1
    while g < num_heads and (g * D) % 128 != 0:
        g += 1
    if num_heads % g != 0:
        g = num_heads
    GW = g * D
    HG = num_heads // g
    aligned = (GW % 128 == 0)

    # q-row tiling bounds the (tq, N) energy tile; k/v keep all N rows per step,
    # so a plain softmax over the full key axis stays exact (no online softmax).
    tq = N
    if N > tq_target:
        t = (tq_target // 8) * 8
        while t >= 8:
            if N % t == 0:
                tq = t
                break
            t -= 8
    NQ = N // tq

    if aligned:
        # q/k/v are three lane-aligned column slabs of the same qkv array
        # (block width GW, multiple of 128): no masked loads, no HBM transposes.
        q_spec = pl.BlockSpec((1, tq, GW), lambda b, hg, qi: (b, qi, hg))
        k_spec = pl.BlockSpec((1, N, GW), lambda b, hg, qi: (b, 0, HG + hg))
        v_spec = pl.BlockSpec((1, N, GW), lambda b, hg, qi: (b, 0, 2 * HG + hg))
        heads_per_step, out_w = g, GW
        q_off = k_off = v_off = 0
        n_groups = HG
    else:
        # Small-E fallback (E < 128): a slab narrower than a lane tile is not a
        # legal BlockSpec width, so hand the kernel the full (., 3E) row block
        # (full last dim is always legal) and slice q/k/v at static offsets.
        q_spec = pl.BlockSpec((1, tq, threeE), lambda b, hg, qi: (b, qi, 0))
        k_spec = pl.BlockSpec((1, N, threeE), lambda b, hg, qi: (b, 0, 0))
        v_spec = pl.BlockSpec((1, N, threeE), lambda b, hg, qi: (b, 0, 0))
        heads_per_step, out_w = num_heads, E
        q_off, k_off, v_off = 0, E, 2 * E
        n_groups = 1

    grid = (B, n_groups, NQ)   # many parallel grid points (megacore / v7x 2-TC)

    return pl.pallas_call(
        partial(_mha_kernel, scale=scale, heads=heads_per_step, head_dim=D,
                q_off=q_off, k_off=k_off, v_off=v_off, compute_dtype=compute_dtype),
        out_shape=jax.ShapeDtypeStruct((B, N, E), qkv.dtype),
        grid=grid,
        in_specs=[q_spec, k_spec, v_spec],
        out_specs=pl.BlockSpec((1, tq, out_w), lambda b, hg, qi: (b, qi, hg)),
        compiler_params=pltpu.CompilerParams(
            dimension_semantics=("parallel", "parallel", "arbitrary"),
            vmem_limit_bytes=_VMEM_LIMIT,
        ),
        cost_estimate=pl.CostEstimate(
            flops=4 * B * num_heads * N * N * D,
            transcendentals=B * num_heads * N * N,
            bytes_accessed=qkv.dtype.itemsize * (B * N * threeE + B * N * E),
        ),
    )(qkv, qkv, qkv)


# ---------------- Parameter prep (one-time) and forward glue ----------------

def prepare_params(params, num_heads, *, compute_dtype=jnp.bfloat16):
    """One-time parameter prep, hoisted out of the forward pass:
      * fold the 'b n (h d qkv) -> qkv b h n d' rearrange into a column
        permutation of the fused qkv weight/bias so the attention kernel reads
        q/k/v as static column slabs and writes 'b n (h d)' directly;
      * cast matmul weights to the compute dtype (bf16) once (biases stay f32)."""
    E = params["w_proj"].shape[0]
    D = E // num_heads
    perm = jnp.arange(3 * E).reshape(num_heads, D, 3).transpose(2, 0, 1).reshape(3 * E)
    return {
        "w_qkv": params["w_qkv"][:, perm].astype(compute_dtype),
        "b_qkv": params["b_qkv"][perm],
        "w_proj": params["w_proj"].astype(compute_dtype),
        "b_proj": params["b_proj"],
    }


def multi_head_attention(x, prepared, num_heads, *, compute_dtype=jnp.bfloat16):
    """Forward pass of the ViT MultiHeadAttention module (mask=None, dropout=0).
    `prepared` must come from prepare_params()."""
    B, N, E = x.shape
    qkv = linear_pallas(x.reshape(B * N, E), prepared["w_qkv"], prepared["b_qkv"])
    qkv = qkv.reshape(B, N, 3 * E)                                   # free reshape
    out = attention_pallas(qkv, num_heads=num_heads, emb_size=E,
                           compute_dtype=compute_dtype)              # (B, N, E)
    # 'b h n d -> b n (h d)' is already the memory layout of `out`.
    out = linear_pallas(out.reshape(B * N, E), prepared["w_proj"], prepared["b_proj"])
    return out.reshape(B, N, E)


def reference_forward(x, params, num_heads):
    """Pure-JAX f32 reference mirroring the PyTorch module exactly."""
    B, N, E = x.shape
    D = E // num_heads
    qkv = x.reshape(B * N, E) @ params["w_qkv"] + params["b_qkv"]
    qkv = qkv.reshape(B, N, num_heads, D, 3)
    q = jnp.transpose(qkv[..., 0], (0, 2, 1, 3))
    k = jnp.transpose(qkv[..., 1], (0, 2, 1, 3))
    v = jnp.transpose(qkv[..., 2], (0, 2, 1, 3))
    energy = jnp.einsum("bhqd,bhkd->bhqk", q, k)
    att = jax.nn.softmax(energy / math.sqrt(float(E)), axis=-1)
    out = jnp.einsum("bhal,bhlv->bhav", att, v)
    out = jnp.transpose(out, (0, 2, 1, 3)).reshape(B * N, E)
    out = out @ params["w_proj"] + params["b_proj"]
    return out.reshape(B, N, E)


def init_params(key, emb_size):
    k1, k2, k3, k4 = jax.random.split(key, 4)
    s = 1.0 / math.sqrt(emb_size)
    return {
        # stored as (in, out), i.e. torch weight transposed
        "w_qkv": jax.random.uniform(k1, (emb_size, 3 * emb_size), jnp.float32, -s, s),
        "b_qkv": jax.random.uniform(k2, (3 * emb_size,), jnp.float32, -s, s),
        "w_proj": jax.random.uniform(k3, (emb_size, emb_size), jnp.float32, -s, s),
        "b_proj": jax.random.uniform(k4, (emb_size,), jnp.float32, -s, s),
    }


if __name__ == "__main__":
    B, N, EMB, HEADS = 2, 8, 32, 4   # head_dim = 8

    key = jax.random.PRNGKey(0)
    kx, kp = jax.random.split(key)
    x = jax.random.normal(kx, (B, N, EMB), dtype=jnp.float32)
    params = init_params(kp, EMB)

    prepared = prepare_params(params, HEADS)          # one-time, hoisted
    fwd = jax.jit(partial(multi_head_attention, num_heads=HEADS))

    out = jax.block_until_ready(fwd(x, prepared))

    ref = reference_forward(x, params, HEADS)
    assert out.shape == (B, N, EMB)
    # bf16 matmul operands (f32 accumulation, f32 softmax stats) + the approximate
    # EUP reciprocal -> compare against the pure-f32 reference at a loose tolerance.
    assert jnp.allclose(out, ref, atol=5e-2, rtol=5e-2), "mismatch vs reference"

    print("KERNEL_OK")
</pallas_src>

<mosaic_0001>
module attributes {stable_mosaic.version = 11 : i64} {
  func.func @_mha_kernel(%arg0: i32, %arg1: i32, %arg2: i32, %arg3: memref<1x8x96xf32, #tpu.memory_space<vmem>>, %arg4: memref<1x8x96xf32, #tpu.memory_space<vmem>>, %arg5: memref<1x8x96xf32, #tpu.memory_space<vmem>>, %arg6: memref<1x8x32xf32, #tpu.memory_space<vmem>>) attributes {dimension_semantics = [#tpu.dimension_semantics<parallel>, #tpu.dimension_semantics<parallel>, #tpu.dimension_semantics<arbitrary>], iteration_bounds = array<i64: 2, 1, 1>, scalar_prefetch = 0 : i64, scratch_operands = 0 : i64, tpu.core_type = #tpu.core_type<tc>, window_params = [{transform_indices = @transform_0, window_bounds = array<i64: 1, 8, 96>}, {transform_indices = @transform_1, window_bounds = array<i64: 1, 8, 96>}, {transform_indices = @transform_2, window_bounds = array<i64: 1, 8, 96>}, {transform_indices = @transform_3, window_bounds = array<i64: 1, 8, 32>}]} {
    %c0 = arith.constant 0 : index
    %c0_0 = arith.constant 0 : index
    %c0_1 = arith.constant 0 : index
    %0 = vector.load %arg3[%c0, %c0_0, %c0_1] : memref<1x8x96xf32, #tpu.memory_space<vmem>>, vector<1x8x8xf32>
    %1 = vector.shape_cast %0 : vector<1x8x8xf32> to vector<8x8xf32>
    %cst = arith.constant 0.176776692 : f32
    %2 = vector.broadcast %cst : f32 to vector<8x8xf32>
    %3 = arith.mulf %1, %2 : vector<8x8xf32>
    %4 = arith.truncf %3 : vector<8x8xf32> to vector<8x8xbf16>
    %c0_2 = arith.constant 0 : index
    %c0_3 = arith.constant 0 : index
    %c32 = arith.constant 32 : index
    %5 = vector.load %arg4[%c0_2, %c0_3, %c32] : memref<1x8x96xf32, #tpu.memory_space<vmem>>, vector<1x8x8xf32>
    %6 = vector.shape_cast %5 : vector<1x8x8xf32> to vector<8x8xf32>
    %7 = arith.truncf %6 : vector<8x8xf32> to vector<8x8xbf16>
    %c0_4 = arith.constant 0 : index
    %c0_5 = arith.constant 0 : index
    %c64 = arith.constant 64 : index
    %8 = vector.load %arg5[%c0_4, %c0_5, %c64] : memref<1x8x96xf32, #tpu.memory_space<vmem>>, vector<1x8x8xf32>
    %9 = vector.shape_cast %8 : vector<1x8x8xf32> to vector<8x8xf32>
    %10 = arith.truncf %9 : vector<8x8xf32> to vector<8x8xbf16>
    %cst_6 = arith.constant dense<0.000000e+00> : vector<8x8xf32>
    %11 = tpu.matmul %4, %7, %cst_6 {dimension_numbers = #tpu.dot_dimension_numbers<[1], [1], [0], [0], [0, 0, 1, 0], [], []>} : vector<8x8xbf16>, vector<8x8xbf16>, vector<8x8xf32> -> vector<8x8xf32>
    %cst_7 = arith.constant dense<0xFF800000> : vector<8xf32>
    %12 = vector.multi_reduction <maximumf>, %11, %cst_7 [1] : vector<8x8xf32> to vector<8xf32>
    %13 = vector.shape_cast %12 : vector<8xf32> to vector<8x1xf32>
    %14 = vector.broadcast %13 : vector<8x1xf32> to vector<8x8xf32>
    %15 = arith.subf %11, %14 : vector<8x8xf32>
    %16 = math.exp %15 : vector<8x8xf32>
    %cst_8 = arith.constant dense<0.000000e+00> : vector<8xf32>
    %17 = vector.multi_reduction <add>, %16, %cst_8 [1] : vector<8x8xf32> to vector<8xf32>
    %18 = vector.shape_cast %17 : vector<8xf32> to vector<8x1xf32>
    %19 = tpu.reciprocal %18 {approx = true} : vector<8x1xf32> -> vector<8x1xf32>
    %20 = vector.broadcast %19 : vector<8x1xf32> to vector<8x8xf32>
    %21 = arith.mulf %16, %20 : vector<8x8xf32>
    %22 = arith.truncf %21 : vector<8x8xf32> to vector<8x8xbf16>
    %cst_9 = arith.constant dense<0.000000e+00> : vector<8x8xf32>
    %23 = tpu.matmul %22, %10, %cst_9 {dimension_numbers = #tpu.dot_dimension_numbers<[1], [0], [0], [1], [0, 0, 1, 1], [], []>} : vector<8x8xbf16>, vector<8x8xbf16>, vector<8x8xf32> -> vector<8x8xf32>
    %c0_10 = arith.constant 0 : index
    %c0_11 = arith.constant 0 : index
    %c8 = arith.constant 8 : index
    %24 = vector.load %arg3[%c0_10, %c0_11, %c8] : memref<1x8x96xf32, #tpu.memory_space<vmem>>, vector<1x8x8xf32>
    %25 = vector.shape_cast %24 : vector<1x8x8xf32> to vector<8x8xf32>
    %cst_12 = arith.constant 0.176776692 : f32
    %26 = vector.broadcast %cst_12 : f32 to vector<8x8xf32>
    %27 = arith.mulf %25, %26 : vector<8x8xf32>
    %28 = arith.truncf %27 : vector<8x8xf32> to vector<8x8xbf16>
    %c0_13 = arith.constant 0 : index
    %c0_14 = arith.constant 0 : index
    %c40 = arith.constant 40 : index
    %29 = vector.load %arg4[%c0_13, %c0_14, %c40] : memref<1x8x96xf32, #tpu.memory_space<vmem>>, vector<1x8x8xf32>
    %30 = vector.shape_cast %29 : vector<1x8x8xf32> to vector<8x8xf32>
    %31 = arith.truncf %30 : vector<8x8xf32> to vector<8x8xbf16>
    %c0_15 = arith.constant 0 : index
    %c0_16 = arith.constant 0 : index
    %c72 = arith.constant 72 : index
    %32 = vector.load %arg5[%c0_15, %c0_16, %c72] : memref<1x8x96xf32, #tpu.memory_space<vmem>>, vector<1x8x8xf32>
    %33 = vector.shape_cast %32 : vector<1x8x8xf32> to vector<8x8xf32>
    %34 = arith.truncf %33 : vector<8x8xf32> to vector<8x8xbf16>
    %cst_17 = arith.constant dense<0.000000e+00> : vector<8x8xf32>
    %35 = tpu.matmul %28, %31, %cst_17 {dimension_numbers = #tpu.dot_dimension_numbers<[1], [1], [0], [0], [0, 0, 1, 0], [], []>} : vector<8x8xbf16>, vector<8x8xbf16>, vector<8x8xf32> -> vector<8x8xf32>
    %cst_18 = arith.constant dense<0xFF800000> : vector<8xf32>
    %36 = vector.multi_reduction <maximumf>, %35, %cst_18 [1] : vector<8x8xf32> to vector<8xf32>
    %37 = vector.shape_cast %36 : vector<8xf32> to vector<8x1xf32>
    %38 = vector.broadcast %37 : vector<8x1xf32> to vector<8x8xf32>
    %39 = arith.subf %35, %38 : vector<8x8xf32>
    %40 = math.exp %39 : vector<8x8xf32>
    %cst_19 = arith.constant dense<0.000000e+00> : vector<8xf32>
    %41 = vector.multi_reduction <add>, %40, %cst_19 [1] : vector<8x8xf32> to vector<8xf32>
    %42 = vector.shape_cast %41 : vector<8xf32> to vector<8x1xf32>
    %43 = tpu.reciprocal %42 {approx = true} : vector<8x1xf32> -> vector<8x1xf32>
    %44 = vector.broadcast %43 : vector<8x1xf32> to vector<8x8xf32>
    %45 = arith.mulf %40, %44 : vector<8x8xf32>
    %46 = arith.truncf %45 : vector<8x8xf32> to vector<8x8xbf16>
    %cst_20 = arith.constant dense<0.000000e+00> : vector<8x8xf32>
    %47 = tpu.matmul %46, %34, %cst_20 {dimension_numbers = #tpu.dot_dimension_numbers<[1], [0], [0], [1], [0, 0, 1, 1], [], []>} : vector<8x8xbf16>, vector<8x8xbf16>, vector<8x8xf32> -> vector<8x8xf32>
    %c0_21 = arith.constant 0 : index
    %c0_22 = arith.constant 0 : index
    %c16 = arith.constant 16 : index
    %48 = vector.load %arg3[%c0_21, %c0_22, %c16] : memref<1x8x96xf32, #tpu.memory_space<vmem>>, vector<1x8x8xf32>
    %49 = vector.shape_cast %48 : vector<1x8x8xf32> to vector<8x8xf32>
    %cst_23 = arith.constant 0.176776692 : f32
    %50 = vector.broadcast %cst_23 : f32 to vector<8x8xf32>
    %51 = arith.mulf %49, %50 : vector<8x8xf32>
    %52 = arith.truncf %51 : vector<8x8xf32> to vector<8x8xbf16>
    %c0_24 = arith.constant 0 : index
    %c0_25 = arith.constant 0 : index
    %c48 = arith.constant 48 : index
    %53 = vector.load %arg4[%c0_24, %c0_25, %c48] : memref<1x8x96xf32, #tpu.memory_space<vmem>>, vector<1x8x8xf32>
    %54 = vector.shape_cast %53 : vector<1x8x8xf32> to vector<8x8xf32>
    %55 = arith.truncf %54 : vector<8x8xf32> to vector<8x8xbf16>
    %c0_26 = arith.constant 0 : index
    %c0_27 = arith.constant 0 : index
    %c80 = arith.constant 80 : index
    %56 = vector.load %arg5[%c0_26, %c0_27, %c80] : memref<1x8x96xf32, #tpu.memory_space<vmem>>, vector<1x8x8xf32>
    %57 = vector.shape_cast %56 : vector<1x8x8xf32> to vector<8x8xf32>
    %58 = arith.truncf %57 : vector<8x8xf32> to vector<8x8xbf16>
    %cst_28 = arith.constant dense<0.000000e+00> : vector<8x8xf32>
    %59 = tpu.matmul %52, %55, %cst_28 {dimension_numbers = #tpu.dot_dimension_numbers<[1], [1], [0], [0], [0, 0, 1, 0], [], []>} : vector<8x8xbf16>, vector<8x8xbf16>, vector<8x8xf32> -> vector<8x8xf32>
    %cst_29 = arith.constant dense<0xFF800000> : vector<8xf32>
    %60 = vector.multi_reduction <maximumf>, %59, %cst_29 [1] : vector<8x8xf32> to vector<8xf32>
    %61 = vector.shape_cast %60 : vector<8xf32> to vector<8x1xf32>
    %62 = vector.broadcast %61 : vector<8x1xf32> to vector<8x8xf32>
    %63 = arith.subf %59, %62 : vector<8x8xf32>
    %64 = math.exp %63 : vector<8x8xf32>
    %cst_30 = arith.constant dense<0.000000e+00> : vector<8xf32>
    %65 = vector.multi_reduction <add>, %64, %cst_30 [1] : vector<8x8xf32> to vector<8xf32>
    %66 = vector.shape_cast %65 : vector<8xf32> to vector<8x1xf32>
    %67 = tpu.reciprocal %66 {approx = true} : vector<8x1xf32> -> vector<8x1xf32>
    %68 = vector.broadcast %67 : vector<8x1xf32> to vector<8x8xf32>
    %69 = arith.mulf %64, %68 : vector<8x8xf32>
    %70 = arith.truncf %69 : vector<8x8xf32> to vector<8x8xbf16>
    %cst_31 = arith.constant dense<0.000000e+00> : vector<8x8xf32>
    %71 = tpu.matmul %70, %58, %cst_31 {dimension_numbers = #tpu.dot_dimension_numbers<[1], [0], [0], [1], [0, 0, 1, 1], [], []>} : vector<8x8xbf16>, vector<8x8xbf16>, vector<8x8xf32> -> vector<8x8xf32>
    %c0_32 = arith.constant 0 : index
    %c0_33 = arith.constant 0 : index
    %c24 = arith.constant 24 : index
    %72 = vector.load %arg3[%c0_32, %c0_33, %c24] : memref<1x8x96xf32, #tpu.memory_space<vmem>>, vector<1x8x8xf32>
    %73 = vector.shape_cast %72 : vector<1x8x8xf32> to vector<8x8xf32>
    %cst_34 = arith.constant 0.176776692 : f32
    %74 = vector.broadcast %cst_34 : f32 to vector<8x8xf32>
    %75 = arith.mulf %73, %74 : vector<8x8xf32>
    %76 = arith.truncf %75 : vector<8x8xf32> to vector<8x8xbf16>
    %c0_35 = arith.constant 0 : index
    %c0_36 = arith.constant 0 : index
    %c56 = arith.constant 56 : index
    %77 = vector.load %arg4[%c0_35, %c0_36, %c56] : memref<1x8x96xf32, #tpu.memory_space<vmem>>, vector<1x8x8xf32>
    %78 = vector.shape_cast %77 : vector<1x8x8xf32> to vector<8x8xf32>
    %79 = arith.truncf %78 : vector<8x8xf32> to vector<8x8xbf16>
    %c0_37 = arith.constant 0 : index
    %c0_38 = arith.constant 0 : index
    %c88 = arith.constant 88 : index
    %80 = vector.load %arg5[%c0_37, %c0_38, %c88] : memref<1x8x96xf32, #tpu.memory_space<vmem>>, vector<1x8x8xf32>
    %81 = vector.shape_cast %80 : vector<1x8x8xf32> to vector<8x8xf32>
    %82 = arith.truncf %81 : vector<8x8xf32> to vector<8x8xbf16>
    %cst_39 = arith.constant dense<0.000000e+00> : vector<8x8xf32>
    %83 = tpu.matmul %76, %79, %cst_39 {dimension_numbers = #tpu.dot_dimension_numbers<[1], [1], [0], [0], [0, 0, 1, 0], [], []>} : vector<8x8xbf16>, vector<8x8xbf16>, vector<8x8xf32> -> vector<8x8xf32>
    %cst_40 = arith.constant dense<0xFF800000> : vector<8xf32>
    %84 = vector.multi_reduction <maximumf>, %83, %cst_40 [1] : vector<8x8xf32> to vector<8xf32>
    %85 = vector.shape_cast %84 : vector<8xf32> to vector<8x1xf32>
    %86 = vector.broadcast %85 : vector<8x1xf32> to vector<8x8xf32>
    %87 = arith.subf %83, %86 : vector<8x8xf32>
    %88 = math.exp %87 : vector<8x8xf32>
    %cst_41 = arith.constant dense<0.000000e+00> : vector<8xf32>
    %89 = vector.multi_reduction <add>, %88, %cst_41 [1] : vector<8x8xf32> to vector<8xf32>
    %90 = vector.shape_cast %89 : vector<8xf32> to vector<8x1xf32>
    %91 = tpu.reciprocal %90 {approx = true} : vector<8x1xf32> -> vector<8x1xf32>
    %92 = vector.broadcast %91 : vector<8x1xf32> to vector<8x8xf32>
    %93 = arith.mulf %88, %92 : vector<8x8xf32>
    %94 = arith.truncf %93 : vector<8x8xf32> to vector<8x8xbf16>
    %cst_42 = arith.constant dense<0.000000e+00> : vector<8x8xf32>
    %95 = tpu.matmul %94, %82, %cst_42 {dimension_numbers = #tpu.dot_dimension_numbers<[1], [0], [0], [1], [0, 0, 1, 1], [], []>} : vector<8x8xbf16>, vector<8x8xbf16>, vector<8x8xf32> -> vector<8x8xf32>
    %96 = tpu.concatenate %23, %47, %71, %95 in 1 : vector<8x8xf32>, vector<8x8xf32>, vector<8x8xf32>, vector<8x8xf32> -> vector<8x32xf32>
    %c0_43 = arith.constant 0 : index
    %c0_44 = arith.constant 0 : index
    %c0_45 = arith.constant 0 : index
    %97 = vector.load %arg6[%c0_43, %c0_44, %c0_45] : memref<1x8x32xf32, #tpu.memory_space<vmem>>, vector<1x8x32xf32>
    %98 = vector.shape_cast %97 : vector<1x8x32xf32> to vector<8x32xf32>
    %99 = vector.shape_cast %96 : vector<8x32xf32> to vector<1x8x32xf32>
    tpu.vector_store %arg6[%c0_43, %c0_44, %c0_45], %99 {strides = array<i32>} : memref<1x8x32xf32, #tpu.memory_space<vmem>>, vector<1x8x32xf32>,
    return
  }
  func.func @transform_0(%arg0: i32, %arg1: i32, %arg2: i32) -> (i32, i32, i32) {
    %c0_i32 = arith.constant 0 : i32
    %c0_i32_0 = arith.constant 0 : i32
    return %arg0, %arg2, %c0_i32 : i32, i32, i32
  }
  func.func @transform_1(%arg0: i32, %arg1: i32, %arg2: i32) -> (i32, i32, i32) {
    %c0_i32 = arith.constant 0 : i32
    %c0_i32_0 = arith.constant 0 : i32
    %c0_i32_1 = arith.constant 0 : i32
    return %arg0, %c0_i32, %c0_i32_0 : i32, i32, i32
  }
  func.func @transform_2(%arg0: i32, %arg1: i32, %arg2: i32) -> (i32, i32, i32) {
    %c0_i32 = arith.constant 0 : i32
    %c0_i32_0 = arith.constant 0 : i32
    %c0_i32_1 = arith.constant 0 : i32
    return %arg0, %c0_i32, %c0_i32_0 : i32, i32, i32
  }
  func.func @transform_3(%arg0: i32, %arg1: i32, %arg2: i32) -> (i32, i32, i32) {
    %c0_i32 = arith.constant 0 : i32
    return %arg0, %arg2, %arg1 : i32, i32, i32
  }
}

module attributes {stable_mosaic.version = 11 : i64} {
  func.func @_linear_kernel(%arg0: i32, %arg1: i32, %arg2: i32, %arg3: memref<16x32xf32, #tpu.memory_space<vmem>>, %arg4: memref<32x32xbf16, #tpu.memory_space<vmem>>, %arg5: memref<1x32xf32, #tpu.memory_space<vmem>>, %arg6: memref<16x32xf32, #tpu.memory_space<vmem>>, %arg7: memref<16x32xf32, #tpu.memory_space<vmem>>) attributes {dimension_semantics = [#tpu.dimension_semantics<parallel>, #tpu.dimension_semantics<parallel>, #tpu.dimension_semantics<arbitrary>], iteration_bounds = array<i64: 1, 1, 1>, scalar_prefetch = 0 : i64, scratch_operands = 1 : i64, tpu.core_type = #tpu.core_type<tc>, window_params = [{transform_indices = @transform_0, window_bounds = array<i64: 16, 32>}, {transform_indices = @transform_1, window_bounds = array<i64: 32, 32>}, {transform_indices = @transform_2, window_bounds = array<i64: 1, 32>}, {transform_indices = @transform_3, window_bounds = array<i64: 16, 32>}]} {
    %c0_i32 = arith.constant 0 : i32
    %0 = arith.cmpi eq, %arg2, %c0_i32 : i32
    %1 = arith.extui %0 : i1 to i32
    %c0_i32_0 = arith.constant 0 : i32
    %2 = arith.cmpi ne, %1, %c0_i32_0 : i32
    scf.if %2 {
      %c0_10 = arith.constant 0 : index
      %c0_11 = arith.constant 0 : index
      %13 = vector.load %arg5[%c0_10, %c0_11] : memref<1x32xf32, #tpu.memory_space<vmem>>, vector<1x32xf32>
      %14 = vector.shape_cast %13 : vector<1x32xf32> to vector<1x32xf32>
      %15 = vector.broadcast %14 : vector<1x32xf32> to vector<16x32xf32>
      %c0_12 = arith.constant 0 : index
      %c0_13 = arith.constant 0 : index
      %16 = vector.load %arg7[%c0_12, %c0_13] : memref<16x32xf32, #tpu.memory_space<vmem>>, vector<16x32xf32>
      tpu.vector_store %arg7[%c0_12, %c0_13], %15 {strides = array<i32>} : memref<16x32xf32, #tpu.memory_space<vmem>>, vector<16x32xf32>,
    } else {
    }
    %c0 = arith.constant 0 : index
    %c0_1 = arith.constant 0 : index
    %3 = vector.load %arg7[%c0, %c0_1] : memref<16x32xf32, #tpu.memory_space<vmem>>, vector<16x32xf32>
    %c0_2 = arith.constant 0 : index
    %c0_3 = arith.constant 0 : index
    %4 = vector.load %arg3[%c0_2, %c0_3] : memref<16x32xf32, #tpu.memory_space<vmem>>, vector<16x32xf32>
    %5 = arith.truncf %4 : vector<16x32xf32> to vector<16x32xbf16>
    %c0_4 = arith.constant 0 : index
    %c0_5 = arith.constant 0 : index
    %6 = vector.load %arg4[%c0_4, %c0_5] : memref<32x32xbf16, #tpu.memory_space<vmem>>, vector<32x32xbf16>
    %cst = arith.constant dense<0.000000e+00> : vector<16x32xf32>
    %7 = tpu.matmul %5, %6, %cst {dimension_numbers = #tpu.dot_dimension_numbers<[1], [0], [0], [1], [0, 0, 1, 1], [], []>} : vector<16x32xbf16>, vector<32x32xbf16>, vector<16x32xf32> -> vector<16x32xf32>
    %8 = arith.addf %3, %7 : vector<16x32xf32>
    %c0_6 = arith.constant 0 : index
    %c0_7 = arith.constant 0 : index
    %9 = vector.load %arg7[%c0_6, %c0_7] : memref<16x32xf32, #tpu.memory_space<vmem>>, vector<16x32xf32>
    tpu.vector_store %arg7[%c0_6, %c0_7], %8 {strides = array<i32>} : memref<16x32xf32, #tpu.memory_space<vmem>>, vector<16x32xf32>,
    %c0_i32_8 = arith.constant 0 : i32
    %10 = arith.cmpi eq, %arg2, %c0_i32_8 : i32
    %11 = arith.extui %10 : i1 to i32
    %c0_i32_9 = arith.constant 0 : i32
    %12 = arith.cmpi ne, %11, %c0_i32_9 : i32
    scf.if %12 {
      %c0_10 = arith.constant 0 : index
      %c0_11 = arith.constant 0 : index
      %13 = vector.load %arg7[%c0_10, %c0_11] : memref<16x32xf32, #tpu.memory_space<vmem>>, vector<16x32xf32>
      %c0_12 = arith.constant 0 : index
      %c0_13 = arith.constant 0 : index
      %14 = vector.load %arg6[%c0_12, %c0_13] : memref<16x32xf32, #tpu.memory_space<vmem>>, vector<16x32xf32>
      tpu.vector_store %arg6[%c0_12, %c0_13], %13 {strides = array<i32>} : memref<16x32xf32, #tpu.memory_space<vmem>>, vector<16x32xf32>,
    } else {
    }
    return
  }
  func.func @transform_0(%arg0: i32, %arg1: i32, %arg2: i32) -> (i32, i32) {
    %c0_i32 = arith.constant 0 : i32
    return %arg0, %arg2 : i32, i32
  }
  func.func @transform_1(%arg0: i32, %arg1: i32, %arg2: i32) -> (i32, i32) {
    %c0_i32 = arith.constant 0 : i32
    return %arg2, %arg1 : i32, i32
  }
  func.func @transform_2(%arg0: i32, %arg1: i32, %arg2: i32) -> (i32, i32) {
    %c0_i32 = arith.constant 0 : i32
    %c0_i32_0 = arith.constant 0 : i32
    return %c0_i32, %arg1 : i32, i32
  }
  func.func @transform_3(%arg0: i32, %arg1: i32, %arg2: i32) -> (i32, i32) {
    %c0_i32 = arith.constant 0 : i32
    return %arg0, %arg1 : i32, i32
  }
}

module attributes {stable_mosaic.version = 11 : i64} {
  func.func @_linear_kernel(%arg0: i32, %arg1: i32, %arg2: i32, %arg3: memref<16x32xf32, #tpu.memory_space<vmem>>, %arg4: memref<32x96xbf16, #tpu.memory_space<vmem>>, %arg5: memref<1x96xf32, #tpu.memory_space<vmem>>, %arg6: memref<16x96xf32, #tpu.memory_space<vmem>>, %arg7: memref<16x96xf32, #tpu.memory_space<vmem>>) attributes {dimension_semantics = [#tpu.dimension_semantics<parallel>, #tpu.dimension_semantics<parallel>, #tpu.dimension_semantics<arbitrary>], iteration_bounds = array<i64: 1, 1, 1>, scalar_prefetch = 0 : i64, scratch_operands = 1 : i64, tpu.core_type = #tpu.core_type<tc>, window_params = [{transform_indices = @transform_0, window_bounds = array<i64: 16, 32>}, {transform_indices = @transform_1, window_bounds = array<i64: 32, 96>}, {transform_indices = @transform_2, window_bounds = array<i64: 1, 96>}, {transform_indices = @transform_3, window_bounds = array<i64: 16, 96>}]} {
    %c0_i32 = arith.constant 0 : i32
    %0 = arith.cmpi eq, %arg2, %c0_i32 : i32
    %1 = arith.extui %0 : i1 to i32
    %c0_i32_0 = arith.constant 0 : i32
    %2 = arith.cmpi ne, %1, %c0_i32_0 : i32
    scf.if %2 {
      %c0_10 = arith.constant 0 : index
      %c0_11 = arith.constant 0 : index
      %13 = vector.load %arg5[%c0_10, %c0_11] : memref<1x96xf32, #tpu.memory_space<vmem>>, vector<1x96xf32>
      %14 = vector.shape_cast %13 : vector<1x96xf32> to vector<1x96xf32>
      %15 = vector.broadcast %14 : vector<1x96xf32> to vector<16x96xf32>
      %c0_12 = arith.constant 0 : index
      %c0_13 = arith.constant 0 : index
      %16 = vector.load %arg7[%c0_12, %c0_13] : memref<16x96xf32, #tpu.memory_space<vmem>>, vector<16x96xf32>
      tpu.vector_store %arg7[%c0_12, %c0_13], %15 {strides = array<i32>} : memref<16x96xf32, #tpu.memory_space<vmem>>, vector<16x96xf32>,
    } else {
    }
    %c0 = arith.constant 0 : index
    %c0_1 = arith.constant 0 : index
    %3 = vector.load %arg7[%c0, %c0_1] : memref<16x96xf32, #tpu.memory_space<vmem>>, vector<16x96xf32>
    %c0_2 = arith.constant 0 : index
    %c0_3 = arith.constant 0 : index
    %4 = vector.load %arg3[%c0_2, %c0_3] : memref<16x32xf32, #tpu.memory_space<vmem>>, vector<16x32xf32>
    %5 = arith.truncf %4 : vector<16x32xf32> to vector<16x32xbf16>
    %c0_4 = arith.constant 0 : index
    %c0_5 = arith.constant 0 : index
    %6 = vector.load %arg4[%c0_4, %c0_5] : memref<32x96xbf16, #tpu.memory_space<vmem>>, vector<32x96xbf16>
    %cst = arith.constant dense<0.000000e+00> : vector<16x96xf32>
    %7 = tpu.matmul %5, %6, %cst {dimension_numbers = #tpu.dot_dimension_numbers<[1], [0], [0], [1], [0, 0, 1, 1], [], []>} : vector<16x32xbf16>, vector<32x96xbf16>, vector<16x96xf32> -> vector<16x96xf32>
    %8 = arith.addf %3, %7 : vector<16x96xf32>
    %c0_6 = arith.constant 0 : index
    %c0_7 = arith.constant 0 : index
    %9 = vector.load %arg7[%c0_6, %c0_7] : memref<16x96xf32, #tpu.memory_space<vmem>>, vector<16x96xf32>
    tpu.vector_store %arg7[%c0_6, %c0_7], %8 {strides = array<i32>} : memref<16x96xf32, #tpu.memory_space<vmem>>, vector<16x96xf32>,
    %c0_i32_8 = arith.constant 0 : i32
    %10 = arith.cmpi eq, %arg2, %c0_i32_8 : i32
    %11 = arith.extui %10 : i1 to i32
    %c0_i32_9 = arith.constant 0 : i32
    %12 = arith.cmpi ne, %11, %c0_i32_9 : i32
    scf.if %12 {
      %c0_10 = arith.constant 0 : index
      %c0_11 = arith.constant 0 : index
      %13 = vector.load %arg7[%c0_10, %c0_11] : memref<16x96xf32, #tpu.memory_space<vmem>>, vector<16x96xf32>
      %c0_12 = arith.constant 0 : index
      %c0_13 = arith.constant 0 : index
      %14 = vector.load %arg6[%c0_12, %c0_13] : memref<16x96xf32, #tpu.memory_space<vmem>>, vector<16x96xf32>
      tpu.vector_store %arg6[%c0_12, %c0_13], %13 {strides = array<i32>} : memref<16x96xf32, #tpu.memory_space<vmem>>, vector<16x96xf32>,
    } else {
    }
    return
  }
  func.func @transform_0(%arg0: i32, %arg1: i32, %arg2: i32) -> (i32, i32) {
    %c0_i32 = arith.constant 0 : i32
    return %arg0, %arg2 : i32, i32
  }
  func.func @transform_1(%arg0: i32, %arg1: i32, %arg2: i32) -> (i32, i32) {
    %c0_i32 = arith.constant 0 : i32
    return %arg2, %arg1 : i32, i32
  }
  func.func @transform_2(%arg0: i32, %arg1: i32, %arg2: i32) -> (i32, i32) {
    %c0_i32 = arith.constant 0 : i32
    %c0_i32_0 = arith.constant 0 : i32
    return %c0_i32, %arg1 : i32, i32
  }
  func.func @transform_3(%arg0: i32, %arg1: i32, %arg2: i32) -> (i32, i32) {
    %c0_i32 = arith.constant 0 : i32
    return %arg0, %arg1 : i32, i32
  }
}

</mosaic_0001>

<bundles_post_ra>
// kernel: multi_head_attention.5
= control target key start
LH: loop header
LB: loop body
LE: loop exit
PB: predicated region body
PF: predicated region fallthrough
CT: control target
= control target key end

     0   :  { %vm24_vm0 = vcmask 261120   ;;  %s184_s0 = inlined_call_operand.vmem [shape: f32[16,32], index: 0, kind: input, shape index: {}]   ;;  %s185_s1 = inlined_call_operand.vmem [shape: bf16[32,32], index: 1, kind: input, shape index: {}]   ;;  %s186_s2 = inlined_call_operand.vmem [shape: f32[1,32], index: 2, kind: input, shape index: {}]   ;;  %s187_s3 = inlined_call_operand.hbm [shape: f32[16,32], index: 3, kind: output, shape index: {}]  }
   0x1   :  { %v105_v0 = vld [vmem:[%s185_s1 + $0x8] sm:$0xff]  ;;  %v104_v1 = vld [vmem:[%s185_s1] sm:$0xff] }
   0x2   :  { %v109_v2 = vld [vmem:[%s186_s2] ss:$0 sm:$0xff]  ;;  %58 = vmatpush.bf16.msra.mxu0 %v105_v0  ;;  %v30_v4 = vld [vmem:[%s184_s0 + $0x8] sm:$0xff] }
   0x3   :  { %v29_v3 = vld [vmem:[%s184_s0] sm:$0xff] }
   0x4   :  { %8 = vsyncpa [#allocation4], 0  ;;  %25 = vst.msk [vmem:[#allocation2] sm:$0xff] %vm24_vm0, %v109_v2  ;;  %v31_v5 = vpack.c.bf16 %v30_v4, %v29_v3  ;;  %s136_s0 = smov [#allocation3]   ;;  %s83_s23 = sshll.u32 %s187_s3, 4  ;;  %s84_s23 = int_to_ptr.hbm [resolvable:$true] %s83_s23 }
   0x5   :  { %26 = vst.msk [vmem:[#allocation2 + $0x8] sm:$0xff] %vm24_vm0, %v109_v2  ;;  %s81_s1 = sshll.u32 %s136_s0, 4  ;;  %s137_s24 = smov 128   ;;  %s82_s1 = int_to_ptr.vmem [resolvable:$true] %s81_s1 }
   0x6   :  { %59 = vmatpush.bf16.msra.mxu0 %v104_v1  ;;  %s138_s25 = smov 8  }
   0x9   :  { %103 = vmatmul.msk.bf16.vlgmr.msra.gmra.mxu0 %vm24_vm0, %v31_v5 }
   0xb   :  { %v27_v6 = vld [vmem:[#allocation2] sm:$0xff] }
   0xc   :  { %v28_v9 = vld [vmem:[#allocation2 + $0x8] sm:$0xff] }
  0x86   :  { %v61_v7 = vpop.f32.mrf.mxu0 }
  0x87   :  { %v66_v8 = vadd.f32 %v61_v7, %v27_v6 }
  0x89   :  { %68 = vst.msk [vmem:[#allocation2] sm:$0xff] %vm24_vm0, %v66_v8 }
  0x8e   :  { %v63_v10 = vpop.f32.mrf.mxu0 }
  0x8f   :  { %v67_v11 = vadd.f32 %v63_v10, %v28_v9 }
  0x90   :  { %v73_v12 = vld [vmem:[#allocation2] sm:$0xff] }
  0x91   :  { %69 = vst.msk [vmem:[#allocation2 + $0x8] sm:$0xff] %vm24_vm0, %v67_v11 }
  0x92   :  { %75 = vst.msk [vmem:[#allocation3] sm:$0xff] %vm24_vm0, %v73_v12 }
  0x98   :  { %v74_v13 = vld [vmem:[#allocation2 + $0x8] sm:$0xff] }
  0x99   :  { %76 = vst.msk [vmem:[#allocation3 + $0x8] sm:$0xff] %vm24_vm0, %v74_v13 }
  0x9a   :  { %89 = dma.vmem_to_hbm [thread:$0]  %s82_s1, 256, %s84_s23, [#allocation4], %s137_s24, %s137_s24, %s138_s25  }
  0x9b   :  { %134 = dma.done.wait [#allocation4], 256  }
  0x9c   :  { %135 = vsyncadd [#allocation4], 4294967040 }
  0x9d   :  { %94 = vsyncpa [#allocation4], 1 }

// kernel: multi_head_attention.4
= control target key start
LH: loop header
LB: loop body
LE: loop exit
PB: predicated region body
PF: predicated region fallthrough
CT: control target
= control target key end

     0   :  { %s742_s12 = smov 0   ;;  %s744_s13 = smov 0   ;;  %s821_s0 = inlined_call_operand.vmem [shape: f32[2,8,96], index: 0, kind: input, shape index: {}, may-alias: {0,1,2}]   ;;  %s822_s1 = inlined_call_operand.vmem [shape: f32[2,8,96], index: 1, kind: input, shape index: {}, may-alias: {0,1,2}]   ;;  %s823_s2 = inlined_call_operand.vmem [shape: f32[2,8,96], index: 2, kind: input, shape index: {}, may-alias: {0,1,2}]   ;;  %s824_s3 = inlined_call_operand.vmem [shape: f32[2,8,32], index: 3, kind: output, shape index: {}]  }
   0x1   :  { %s746_s14 = smov 0  }
   0x2 LB: > { %s32_s15 = sadd.s32 1, %s702_s13  ;;  %p615_p0 = scmp.ge.s32.totalorder %s706_s14, 1  ;;  %s706_s14 = sphi %s746_s14, %s13_s14   ;;  %s702_s13 = sphi %s744_s13, %s826_s13   ;;  %s698_s12 = sphi %s742_s12, %s825_s12  }
   0x3   : > { %p34_p1 = scmp.ge.s32.totalorder %s32_s15, 2  ;;  %p182_p2 = scmp.lt.s32.totalorder %s706_s14, 3 }
   0x5   : > { %s828_s15 = smov (%p34_p1, %s32_s15), 0  ;;  %p183_p3 = pnand %p615_p0, %p182_p2 }
   0x6   : > { %p221_p4 = scmp.lt.s32.totalorder (!%p183_p3), %s698_s12, 1  ;;  %s708_s20 = smov (!%p183_p3), 96  }
   0x7   : > { %186 = sbr.rel (%p183_p3) target bundleno = 1190 (0x4a6), region = 32  ;;  %s709_s21 = smov (!%p183_p3), 88  }
   0x8   : > { %s710_s25 = smov (!%p183_p3), 120   ;;  %s711_s29 = smov (!%p183_p3), 64  }
   0x9   : > { %s712_s30 = smov (!%p183_p3), 80   ;;  %s713_s4 = smov (!%p183_p3), 72  }
   0xa   : > { %s714_s5 = smov (!%p183_p3), 112   ;;  %s715_s6 = smov (!%p183_p3), 104  }
   0xb   : > { %s716_s7 = smov (!%p183_p3), 56   ;;  %s717_s8 = smov (!%p183_p3), 40  }
   0xc   : > { %s830_s12 = smov (!%p221_p4, %s698_s12), 1  ;;  %vm257_vm0 = vcmask 64512   ;;  %vm295_vm1 = vcmask 1043456   ;;  %s718_s9 = smov 48   ;;  %vm494_vm2 = vcmask 130048   ;;  %vm496_vm3 = vcmask 195584  }
   0xd   : > { %s760_s16 = sshll.u32 %s830_s12, 3  ;;  %s719_s10 = smov 8   ;;  %vm498_vm4 = vcmask 261120  }
   0xe   : > { %s231_s19 = scalar_lea.vmem %s822_s1, %s760_s16  ;;  %s227_s24 = scalar_lea.vmem %s821_s0, %s760_s16 }
   0xf   : > { %v250_v0 = vld [vmem:[%s231_s19] sm:$0xff]  ;;  %s235_s28 = scalar_lea.vmem %s823_s2, %s760_s16  ;;  %s720_s11 = smov 16  }
  0x10   : > { %v251_v1 = vpack.c.bf16 %v250_v0, %v250_v0  ;;  %v247_v2 = vld [vmem:[%s227_s24] sm:$0xff]  ;;  %s721_s12 = smov 24   ;;  %s245_s19 = scalar_lea.vmem %s824_s3, %s760_s16 }
  0x11   : > { %v248_v5 = vmul.f32 0.17677669, %v247_v2  ;;  %v252_v7 = vld [vmem:[%s235_s28] sm:$0xff] }
  0x12   : > { %255 = vrot.lane.b32.xlu0 %v251_v1, %s708_s20  ;;  %315 = vrot.lane.b32.xlu1 %v251_v1, %s709_s21  ;;  %v776_v8 = vpack.c.bf16 %v252_v7, %v252_v7 }
  0x13   : > { %v249_v6 = vpack.c.bf16 %v248_v5, %v248_v5 }
  0x15   : > { %313 = vrot.lane.b32.xlu2 %v249_v6, %s710_s25 }
  0x1d   : > { %290 = vrot.lane.b32.xlu2 %v776_v8, %s711_s29 }
  0x25   : > { %371 = vrot.lane.b32.xlu2 %v251_v1, %s712_s30 }
  0x2d   : > { %427 = vrot.lane.b32.xlu2 %v251_v1, %s713_s4 }
  0x35   : > { %369 = vrot.lane.b32.xlu2 %v249_v6, %s714_s5 }
  0x3d   : > { %425 = vrot.lane.b32.xlu2 %v249_v6, %s715_s6 }
  0x6f   : > { %v314_v11 = vpop.permute.xlu2 %313 }
  0x77   : > { %v291_v15 = vpop.permute.xlu2 %290 }
  0x78   : > { %v297_v20 = vsel %vm295_vm1, %v291_v15, 0 }
  0x79   : > { %306 = vmatpush.bf16.msra.mxu1 %v297_v20 }
  0x7f   : > { %v372_v16 = vpop.permute.xlu2 %371 }
  0x80   : > { %v377_v18 = vsel %vm257_vm0, %v372_v16, 0 }
  0x81   : > { %386 = vmatpush.bf16.xpose.msrb.mxu1 %v377_v18 }
  0x84   : > { %v256_v3 = vpop.permute.xlu0 %255  ;;  %v316_v9 = vpop.permute.xlu1 %315 }
  0x85   : > { %v262_v4 = vsel %vm257_vm0, %v256_v3, 0  ;;  %v321_v10 = vsel %vm257_vm0, %v316_v9, 0 }
  0x86   : > { %271 = vmatpush.bf16.xpose.msra.mxu0 %v262_v4  ;;  %330 = vmatpush.bf16.xpose.msra.mxu2 %v321_v10 }
  0x87   : > { %v428_v17 = vpop.permute.xlu2 %427 }
  0x88   : > { %v433_v19 = vsel %vm257_vm0, %v428_v17, 0 }
  0x8d   : > { %620 = vmatmul.msk.bf16.vlgmr.msra.gmra.mxu0 %vm257_vm0, %v249_v6  ;;  %622 = vmatmul.msk.bf16.vlgmr.msra.gmra.mxu2 %vm257_vm0, %v314_v11 }
  0x8e   : > { %442 = vmatpush.bf16.xpose.msrb.mxu0 %v433_v19 }
  0x8f   : > { %v370_v21 = vpop.permute.xlu2 %369 }
  0x97   : > { %v426_v22 = vpop.permute.xlu2 %425 }
  0x9d   : > { %626 = vmatmul.msk.bf16.vlgmr.msrb.gmra.mxu0 %vm257_vm0, %v426_v22 }
 0x10a   : > { %v273_v12 = vpop.f32.mrf.mxu0 }
 0x10b   : > { %v277_v13 = vsel %vm257_vm0, %v273_v12, -inf }
 0x10c   : > { %278 = vmax.xlane.f32.xlu0 %v277_v13 }
 0x110   : > { %v332_v25 = vpop.f32.mrf.mxu2 }
 0x111   : > { %v336_v27 = vsel %vm257_vm0, %v332_v25, -inf }
 0x112   : > { %v275_v14 = vpop.f32.mrf.mxu0  ;;  %337 = vmax.xlane.f32.xlu2 %v336_v27 }
 0x118   : > { %v334_v28 = vpop.f32.mrf.mxu2 }
 0x11a   : > { %v444_v31 = vpop.f32.mrf.mxu0 }
 0x11b   : > { %v448_v32 = vsel %vm257_vm0, %v444_v31, -inf }
 0x122   : > { %v446_v34 = vpop.f32.mrf.mxu0 }
 0x17f   : > { %v279_v23 = vpop.xlane.xlu0 %278 }
 0x180   : > { %v280_v24 = vsub.f32 %v273_v12, %v279_v23 }
 0x182   : > { %v281_v26 = vmul.f32 1.442695, %v280_v24 }
 0x184   : > { %668 = vpow2.f32 %v281_v26 }
 0x185   : > { %v338_v39 = vpop.xlane.xlu2 %337 }
 0x186   : > { %v339_v40 = vsub.f32 %v332_v25, %v338_v39 }
 0x188   : > { %v340_v42 = vmul.f32 1.442695, %v339_v40 }
 0x18a   : > { %v669_v29 = vpop.eup %668 }
 0x18b   : > { %v283_v30 = vsel %vm257_vm0, %v669_v29, 0.0 }
 0x18c   : > { %284 = vadd.xlane.f32.xlu1 %v283_v30 }
 0x194   : > { %449 = vmax.xlane.f32.xlu1 %v448_v32 }
 0x1ad   : > { %348 = vrot.lane.b32.xlu1 %v776_v8, %s716_s7 }
 0x1b5   : > { %460 = vrot.lane.b32.xlu1 %v776_v8, %s717_s8 }
 0x1ff   : > { %v285_v33 = vpop.xlane.xlu1 %284 }
 0x200   : > { %670 = vrcp.f32 %v285_v33 }
 0x201   : > { %672 = vpow2.f32 %v340_v42 }
 0x206   : > { %v671_v35 = vpop.eup %670 }
 0x207   : > { %v287_v36 = vmul.f32 %v671_v35, %v669_v29  ;;  %v450_v43 = vpop.xlane.xlu1 %449  ;;  %v673_v48 = vpop.eup %672 }
 0x208   : > { %v451_v44 = vsub.f32 %v444_v31, %v450_v43  ;;  %v342_v50 = vsel %vm257_vm0, %v673_v48, 0.0 }
 0x209   : > { %v288_v37 = vpack.c.bf16 %v287_v36, %v287_v36 }
 0x20a   : > { %v452_v47 = vmul.f32 1.442695, %v451_v44 }
 0x20b   : > { %621 = vmatmul.msk.bf16.vlgmr.msra.gmra.mxu1 %vm257_vm0, %v288_v37 }
 0x20c   : > { %674 = vpow2.f32 %v452_v47 }
 0x212   : > { %v675_v51 = vpop.eup %674 }
 0x213   : > { %v454_v52 = vsel %vm257_vm0, %v675_v51, 0.0 }
 0x21b   : > { %624 = vmatmul.msk.bf16.vlgmr.msrb.gmra.mxu1 %vm257_vm0, %v370_v21 }
 0x21f   : > { %v349_v53 = vpop.permute.xlu1 %348 }
 0x220   : > { %v354_v54 = vsel %vm295_vm1, %v349_v53, 0 }
 0x221   : > { %363 = vmatpush.bf16.msra.mxu3 %v354_v54 }
 0x227   : > { %v461_v55 = vpop.permute.xlu1 %460 }
 0x228   : > { %v466_v56 = vsel %vm295_vm1, %v461_v55, 0 }
 0x229   : > { %475 = vmatpush.bf16.msrb.mxu2 %v466_v56 }
 0x288   : > { %v793_v38 = vpop.f32.mrf.mxu1 }
 0x290   : > { %v310_v41 = vpop.f32.mrf.mxu1 }
 0x298   : > { %v388_v45 = vpop.f32.mrf.mxu1 }
 0x299   : > { %v392_v46 = vsel %vm257_vm0, %v388_v45, -inf }
 0x29a   : > { %393 = vmax.xlane.f32.xlu0 %v392_v46 }
 0x2a0   : > { %v390_v49 = vpop.f32.mrf.mxu1 }
 0x2a2   : > { %343 = vadd.xlane.f32.xlu0 %v342_v50 }
 0x2aa   : > { %455 = vadd.xlane.f32.xlu0 %v454_v52 }
 0x30d   : > { %v394_v57 = vpop.xlane.xlu0 %393 }
 0x30e   : > { %v395_v58 = vsub.f32 %v388_v45, %v394_v57 }
 0x310   : > { %v396_v59 = vmul.f32 1.442695, %v395_v58 }
 0x312   : > { %676 = vpow2.f32 %v396_v59 }
 0x315   : > { %v344_v60 = vpop.xlane.xlu0 %343 }
 0x316   : > { %678 = vrcp.f32 %v344_v60 }
 0x318   : > { %v677_v61 = vpop.eup %676 }
 0x319   : > { %v398_v62 = vsel %vm257_vm0, %v677_v61, 0.0 }
 0x31a   : > { %399 = vadd.xlane.f32.xlu0 %v398_v62 }
 0x31c   : > { %v679_v63 = vpop.eup %678 }
 0x31d   : > { %v456_v0 = vpop.xlane.xlu0 %455  ;;  %v346_v1 = vmul.f32 %v679_v63, %v673_v48 }
 0x31e   : > { %680 = vrcp.f32 %v456_v0 }
 0x31f   : > { %v347_v2 = vpack.c.bf16 %v346_v1, %v346_v1 }
 0x321   : > { %623 = vmatmul.msk.bf16.vlgmr.msra.gmra.mxu3 %vm257_vm0, %v347_v2 }
 0x324   : > { %v681_v3 = vpop.eup %680 }
 0x325   : > { %v458_v4 = vmul.f32 %v681_v3, %v675_v51 }
 0x327   : > { %v459_v5 = vpack.c.bf16 %v458_v4, %v458_v4 }
 0x329   : > { %627 = vmatmul.msk.bf16.vlgmr.msrb.gmra.mxu2 %vm257_vm0, %v459_v5 }
 0x32e   : > { %404 = vrot.lane.b32.xlu0 %v776_v8, %s718_s9 }
 0x38d   : > { %v400_v6 = vpop.xlane.xlu0 %399 }
 0x38e   : > { %682 = vrcp.f32 %v400_v6 }
 0x394   : > { %v683_v7 = vpop.eup %682 }
 0x395   : > { %v402_v9 = vmul.f32 %v683_v7, %v677_v61 }
 0x397   : > { %v403_v12 = vpack.c.bf16 %v402_v9, %v402_v9 }
 0x3a0   : > { %v405_v10 = vpop.permute.xlu0 %404 }
 0x3a1   : > { %v410_v11 = vsel %vm295_vm1, %v405_v10, 0 }
 0x3a2   : > { %419 = vmatpush.bf16.msrb.mxu3 %v410_v11 }
 0x3a4   : > { %v365_v13 = vpop.f32.mrf.mxu3 }
 0x3a5   : > { %625 = vmatmul.msk.bf16.vlgmr.msrb.gmra.mxu3 %vm257_vm0, %v403_v12  ;;  %482 = vrot.lane.b32.xlu2 %v365_v13, %s719_s10 }
 0x3ac   : > { %v367_v14 = vpop.f32.mrf.mxu3  ;;  %v477_v15 = vpop.f32.mrf.mxu2 }
 0x3b4   : > { %v479_v16 = vpop.f32.mrf.mxu2 }
 0x3ff   : > { %v483_v19 = vpop.permute.xlu2 %482 }
 0x400   : > { %v493_v20 = vsel %vm257_vm0, %v793_v38, %v483_v19 }
 0x428   : > { %v421_v17 = vpop.f32.mrf.mxu3 }
 0x429   : > { %486 = vrot.lane.b32.xlu1 %v421_v17, %s720_s11 }
 0x430   : > { %v423_v8 = vpop.f32.mrf.mxu3 }
 0x431   : > { %490 = vrot.lane.b32.xlu1 %v477_v15, %s721_s12 }
 0x49b   : > { %v487_v18 = vpop.permute.xlu1 %486 }
 0x49c   : > { %v495_v21 = vsel %vm494_vm2, %v493_v20, %v487_v18 }
 0x4a3   : > { %v491_v22 = vpop.permute.xlu1 %490 }
 0x4a4   : > { %v497_v23 = vsel %vm496_vm3, %v495_v21, %v491_v22 }
 0x4a5   : > { %499 = vst.msk [vmem:[%s245_s19] sm:$0xff] %vm498_vm4, %v497_v23 }
 0x4a6 PF: > { %s13_s14 = sadd.s32 1, %s706_s14   ;;  %s825_s12 = smov %s702_s13 }
 0x4a7   : > { %p10_p5 = scmp.ge.s32.totalorder %s13_s14, 4   ;;  %s826_s13 = smov %s828_s15 }
 0x4a9   :  { %12 = sbr.rel (!%p10_p5) target bundleno = 2 (0x2), region = 68 }

// kernel: multi_head_attention.3
= control target key start
LH: loop header
LB: loop body
LE: loop exit
PB: predicated region body
PF: predicated region fallthrough
CT: control target
= control target key end

     0   :  { %8 = vsyncpa [#allocation4], 0  ;;  %s232_s0 = inlined_call_operand.hbm [shape: f32[16,32], index: 0, kind: input, shape index: {}]   ;;  %s233_s1 = inlined_call_operand.hbm [shape: bf16[32,96], index: 1, kind: input, shape index: {}]   ;;  %s234_s2 = inlined_call_operand.vmem [shape: f32[1,96], index: 2, kind: input, shape index: {}]   ;;  %s235_s3 = inlined_call_operand.vmem [shape: f32[16,96], index: 3, kind: output, shape index: {}]  }
   0x1   :  { %s14_s14 = sshll.u32 %s232_s0, 4  ;;  %s15_s14 = int_to_ptr.hbm [resolvable:$true] %s14_s14 }
   0x2   :  { %9 = vsyncpa [#allocation6], 0  ;;  %s185_s15 = smov [#allocation3]   ;;  %s27_s19 = sshll.u32 %s233_s1, 4  ;;  %s28_s19 = int_to_ptr.hbm [resolvable:$true] %s27_s19 }
   0x3   :  { %s16_s16 = sshll.u32 %s185_s15, 4  ;;  %s186_s20 = smov 128   ;;  %s17_s16 = int_to_ptr.vmem [resolvable:$true] %s16_s16 }
   0x4   :  { %s187_s21 = smov 8   ;;  %s188_s22 = smov [#allocation5]  }
   0x5   :  { %22 = dma.hbm_to_vmem [thread:$0]  %s15_s14, 256, %s17_s16, [#allocation4], %s186_s20, %s186_s20, %s187_s21  }
   0x6   :  { %s29_s23 = sshll.u32 %s188_s22, 4  ;;  %s189_s24 = smov 64   ;;  %s30_s23 = int_to_ptr.vmem [resolvable:$true] %s29_s23 }
   0x7   :  { %s190_s25 = smov 4  }
   0x8   :  { %35 = dma.hbm_to_vmem [thread:$0]  %s28_s19, 256, %s30_s23, [#allocation6], %s189_s24, %s189_s24, %s190_s25  }
   0x9   :  { %181 = dma.done.wait [#allocation4], 256  }
   0xa   :  { %182 = vsyncadd [#allocation4], 4294967040 }
   0xb   :  { %183 = dma.done.wait [#allocation6], 256  }
   0xc   :  { %184 = vsyncadd [#allocation6], 4294967040  ;;  %v125_v0 = vld [vmem:[#allocation5 + $0x8] sm:$0xff]  ;;  %vm55_vm0 = vcmask 785408   ;;  %v132_v1 = vld [vmem:[%s234_s2] ss:$0 sm:$0xff] }
   0xd   :  { %89 = vmatpush.bf16.msra.mxu0 %v125_v0  ;;  %v124_v2 = vld [vmem:[#allocation5] sm:$0xff]  ;;  %v60_v3 = vld [vmem:[#allocation3] sm:$0xff]  ;;  %v61_v4 = vld [vmem:[#allocation3 + $0x8] sm:$0xff]  ;;  %56 = vst.msk [vmem:[#allocation2] sm:$0xff] %vm55_vm0, %v132_v1  ;;  %vm79_vm1 = vcmask 261120  }
   0xe   :  { %57 = vst.msk [vmem:[#allocation2 + $0x8] sm:$0xff] %vm55_vm0, %v132_v1  ;;  %v62_v5 = vpack.c.bf16 %v61_v4, %v60_v3 }
  0x11   :  { %90 = vmatpush.bf16.msra.mxu0 %v124_v2 }
  0x14   :  { %123 = vmatmul.msk.bf16.vlgmr.msra.gmra.mxu0 %vm79_vm1, %v62_v5  ;;  %v58_v6 = vld [vmem:[#allocation2] sm:$0xff] }
  0x15   :  { %v59_v9 = vld [vmem:[#allocation2 + $0x8] sm:$0xff] }
  0x91   :  { %v92_v7 = vpop.f32.mrf.mxu0 }
  0x92   :  { %v97_v8 = vadd.f32 %v92_v7, %v58_v6 }
  0x94   :  { %100 = vst.msk [vmem:[#allocation2] sm:$0xff] %vm55_vm0, %v97_v8 }
  0x99   :  { %v94_v10 = vpop.f32.mrf.mxu0 }
  0x9a   :  { %v98_v11 = vadd.f32 %v94_v10, %v59_v9 }
  0x9b   :  { %v105_v12 = vld [vmem:[#allocation2] sm:$0xff] }
  0x9c   :  { %107 = vst.msk [vmem:[%s235_s3] sm:$0xff] %vm55_vm0, %v105_v12 }
  0x9d   :  { %101 = vst.msk [vmem:[#allocation2 + $0x8] sm:$0xff] %vm55_vm0, %v98_v11 }
  0xa4   :  { %v106_v13 = vld [vmem:[#allocation2 + $0x8] sm:$0xff] }
  0xa5   :  { %108 = vst.msk [vmem:[%s235_s3 + $0x8] sm:$0xff] %vm55_vm0, %v106_v13 }
  0xa6   :  { %113 = vsyncpa [#allocation4], 1 }
  0xa7   :  { %114 = vsyncpa [#allocation6], 1 }

</bundles_post_ra>
